<compile_context>
chip_gen: v5e
topology: v5e:2x2
jax: 0.10.0
libtpu: 0.0.40
codegen_flags: <defaults>
</compile_context>

<pallas_src>
import jax
import jax.numpy as jnp
from jax.experimental import pallas as pl
from jax.experimental.pallas import tpu as pltpu

_LANE = 128
_SUBLANE = 8


def _round_up(x, m):
    return ((x + m - 1) // m) * m


def _pad_last(x, mult, value=0):
    """Pad the last dim of x up to a multiple of `mult`."""
    pad = (-x.shape[-1]) % mult
    if pad == 0:
        return x
    widths = [(0, 0)] * (x.ndim - 1) + [(0, pad)]
    return jnp.pad(x, widths, constant_values=value)


# ----------------------------------------------------------------------------
# Pallas kernels
# ----------------------------------------------------------------------------
def _weighted_ce_kernel(logits_ref, tc_ref, w_ref, o_ref):
    # logits_ref: (1, Kp, Npad) f32 (lane-dense along N, K padded to mult of 8
    #             with -1e30 rows)
    # tc_ref:     (1, 1, Npad) int32 (target class per column)
    # w_ref:      (1, 1, Npad) f32   (per-column class weight; 0 on padding)
    x = logits_ref[0]                      # (Kp, Npad)
    tc = tc_ref[0]                         # (1, Npad)
    w = w_ref[0]                           # (1, Npad)
    m = jnp.max(x, axis=0, keepdims=True)
    lse = m + jnp.log(jnp.sum(jnp.exp(x - m), axis=0, keepdims=True))
    kk = jax.lax.broadcasted_iota(jnp.int32, x.shape, 0)
    picked = jnp.sum(jnp.where(kk == tc, x, 0.0), axis=0, keepdims=True)
    nll = lse - picked                     # (1, Npad)
    num = jnp.sum(w * nll)
    den = jnp.sum(w)
    o_ref[...] = jnp.full(o_ref.shape, num / den, dtype=jnp.float32)


def _mask_loss_kernel(scalars_ref, logits_ref, labels_ref, omask_ref, odice_ref,
                      bce_acc, num_acc, den_acc):
    # scalars_ref: (2,) f32 in SMEM: [num_masks, num_points].
    # logits_ref / labels_ref: (1, M, TP) bf16 chunk of sampled points.
    # Padded point columns carry logits=-30 / labels=0 -> contribution ~e^-30.
    pblk = pl.program_id(1)

    @pl.when(pblk == 0)
    def _init():
        bce_acc[...] = jnp.zeros_like(bce_acc)
        num_acc[...] = jnp.zeros_like(num_acc)
        den_acc[...] = jnp.zeros_like(den_acc)

    x = logits_ref[0].astype(jnp.float32)  # (M, TP)
    t = labels_ref[0].astype(jnp.float32)

    # Single EUP exp; sigmoid via approx reciprocal (no second exp, no divide).
    e = jnp.exp(-jnp.abs(x))
    bce = jnp.maximum(x, 0.0) - x * t + jnp.log(1.0 + e)
    r = pl.reciprocal(1.0 + e, approx=True)
    s = jnp.where(x >= 0.0, r, e * r)      # sigmoid(x)

    # Lane-dense accumulation only; all cross-lane reductions deferred.
    bce_acc[...] += bce
    num_acc[...] += s * t
    den_acc[...] += s + t

    @pl.when(pblk == pl.num_programs(1) - 1)
    def _finalize():
        num_masks = scalars_ref[0]
        p_actual = scalars_ref[1]
        bce_sum = jnp.sum(bce_acc[...])
        num = jnp.sum(num_acc[...], axis=1, keepdims=True)   # (M,1)
        den = jnp.sum(den_acc[...], axis=1, keepdims=True)
        loss_mask = bce_sum / (p_actual * num_masks)
        dice = 1.0 - (2.0 * num + 1.0) / (den + 1.0)
        loss_dice = jnp.sum(dice) / num_masks
        omask_ref[...] = jnp.full(omask_ref.shape, loss_mask, dtype=jnp.float32)
        odice_ref[...] = jnp.full(odice_ref.shape, loss_dice, dtype=jnp.float32)


def _sd_loss_kernel(feats_ref, ext_ref, tgt_ref, o_ref):
    # feats_ref: (1, C, HWT) bf16 (HW lane-dense chunk), ext_ref: (1, P, C) f32,
    # tgt_ref:   (1, P, HWT) bf16.  Writes per-(batch, hw-chunk) smooth-L1 sum.
    f = feats_ref[0].astype(jnp.float32)   # (C, HWT)
    e = ext_ref[0]                         # (P, C)
    t = tgt_ref[0].astype(jnp.float32)     # (P, HWT)
    eps2 = 1e-12                           # == norm.clamp(min=1e-6) on the norm
    f_n = f * jax.lax.rsqrt(jnp.maximum(jnp.sum(f * f, axis=0, keepdims=True),
                                        eps2))
    e_n = e * jax.lax.rsqrt(jnp.maximum(jnp.sum(e * e, axis=1, keepdims=True),
                                        eps2))
    sim = jnp.dot(e_n.astype(jnp.bfloat16), f_n.astype(jnp.bfloat16),
                  preferred_element_type=jnp.float32)      # (P, HWT) on MXU
    d = sim - t
    ad = jnp.abs(d)
    sl1 = jnp.where(ad < 1.0, 0.5 * d * d, ad - 0.5)
    o_ref[...] = jnp.full(o_ref.shape, jnp.sum(sl1), dtype=jnp.float32)


# ----------------------------------------------------------------------------
# Pallas wrappers
# ----------------------------------------------------------------------------
def weighted_cross_entropy_pallas(logits_lbqk, target_classes_lbq, class_weight):
    """Batched weighted CE across L decoder layers. Returns (L,) losses."""
    L, B, Q, K = logits_lbqk.shape
    N = B * Q
    x = logits_lbqk.reshape(L, N, K).astype(jnp.float32)
    x = jnp.transpose(x, (0, 2, 1))                       # (L, K, N) lane-dense
    # Pad K (sublane dim) to a multiple of 8 with very negative logits: padded
    # rows add exp(-huge)=0 to LSE and can never equal a real target class.
    kpad = (-K) % _SUBLANE
    if kpad:
        x = jnp.pad(x, ((0, 0), (0, kpad), (0, 0)), constant_values=-1e30)
    kp = K + kpad
    tc = target_classes_lbq.reshape(L, N).astype(jnp.int32)
    w = class_weight.astype(jnp.float32)[tc]              # (L, N) per-row weight
    x = _pad_last(x, _LANE, 0.0)
    tc = _pad_last(tc, _LANE, 0)
    w = _pad_last(w, _LANE, 0.0)                          # zero weight on padding
    npad = x.shape[-1]

    out = pl.pallas_call(
        _weighted_ce_kernel,
        out_shape=jax.ShapeDtypeStruct((L, _SUBLANE, _LANE), jnp.float32),
        grid=(L,),
        in_specs=[
            pl.BlockSpec((1, kp, npad), lambda l: (l, 0, 0)),
            pl.BlockSpec((1, 1, npad), lambda l: (l, 0, 0)),
            pl.BlockSpec((1, 1, npad), lambda l: (l, 0, 0)),
        ],
        out_specs=pl.BlockSpec((1, _SUBLANE, _LANE), lambda l: (l, 0, 0)),
        compiler_params=pltpu.CompilerParams(
            dimension_semantics=("parallel",)),
    )(x, tc[:, None, :], w[:, None, :])
    return out[:, 0, 0]


def mask_losses_pallas(point_logits, point_labels, num_masks, *, max_chunk=2048):
    """Batched sigmoid-CE + dice over (L, M, P) sampled points.

    Returns (loss_mask (L,), loss_dice (L,)).
    """
    L, M, P = point_logits.shape
    # Fixed lane-dense chunk; point axis padded up to a multiple of the chunk
    # (no divisor search, no in-kernel tail mask).
    tp = min(int(max_chunk), _round_up(P, _LANE))
    tp = max((tp // _LANE) * _LANE, _LANE)
    ppad = _round_up(P, tp)
    nblk = ppad // tp
    pad = ppad - P

    x = point_logits.astype(jnp.bfloat16)
    t = point_labels.astype(jnp.bfloat16)
    if pad:
        # logits padded with a large negative value (NOT 0): BCE/sigmoid
        # contribution of a padded column is ~exp(-30), numerically negligible.
        x = jnp.pad(x, ((0, 0), (0, 0), (0, pad)), constant_values=-30.0)
        t = jnp.pad(t, ((0, 0), (0, 0), (0, pad)), constant_values=0.0)

    # SMEM scalars -> no recompile when the number of matched masks changes.
    scalars = jnp.array([float(num_masks), float(P)], dtype=jnp.float32)

    lm, ld = pl.pallas_call(
        _mask_loss_kernel,
        out_shape=(jax.ShapeDtypeStruct((L, _SUBLANE, _LANE), jnp.float32),
                   jax.ShapeDtypeStruct((L, _SUBLANE, _LANE), jnp.float32)),
        grid=(L, nblk),
        in_specs=[pl.BlockSpec(memory_space=pltpu.MemorySpace.SMEM),
                  pl.BlockSpec((1, M, tp), lambda l, p: (l, 0, p)),
                  pl.BlockSpec((1, M, tp), lambda l, p: (l, 0, p))],
        out_specs=(pl.BlockSpec((1, _SUBLANE, _LANE), lambda l, p: (l, 0, 0)),
                   pl.BlockSpec((1, _SUBLANE, _LANE), lambda l, p: (l, 0, 0))),
        scratch_shapes=[pltpu.VMEM((M, tp), jnp.float32),    # bce partials
                        pltpu.VMEM((M, tp), jnp.float32),    # dice numerator
                        pltpu.VMEM((M, tp), jnp.float32)],   # dice denominator
        compiler_params=pltpu.CompilerParams(
            dimension_semantics=("parallel", "arbitrary")),
    )(scalars, x, t)
    return lm[:, 0, 0], ld[:, 0, 0]


def sd_loss_pallas(feats_chw, extracted_pc, tgt_sim, *, max_hw_chunk=2048):
    """Cosine-similarity distillation loss.

    feats_chw (N, C, HW), extracted_pc (N, P, C), tgt_sim (N, P, HW).
    """
    N, C, HW = feats_chw.shape
    P = extracted_pc.shape[1]
    hw_tile = min(int(max_hw_chunk), _round_up(HW, _LANE))
    hw_tile = max((hw_tile // _LANE) * _LANE, _LANE)
    hwpad = _round_up(HW, hw_tile)
    n_hw = hwpad // hw_tile

    f = feats_chw.astype(jnp.bfloat16)
    t = tgt_sim.astype(jnp.bfloat16)
    if hwpad != HW:
        # zero-padded HW columns: f_n = 0 -> sim = 0, t = 0 -> smooth-L1 = 0.
        f = jnp.pad(f, ((0, 0), (0, 0), (0, hwpad - HW)))
        t = jnp.pad(t, ((0, 0), (0, 0), (0, hwpad - HW)))
    e = extracted_pc.astype(jnp.float32)

    partial = pl.pallas_call(
        _sd_loss_kernel,
        out_shape=jax.ShapeDtypeStruct((N, n_hw, _SUBLANE, _LANE), jnp.float32),
        grid=(N, n_hw),
        in_specs=[pl.BlockSpec((1, C, hw_tile), lambda n, h: (n, 0, h)),
                  pl.BlockSpec((1, P, C), lambda n, h: (n, 0, 0)),
                  pl.BlockSpec((1, P, hw_tile), lambda n, h: (n, 0, h))],
        out_specs=pl.BlockSpec((1, 1, _SUBLANE, _LANE),
                               lambda n, h: (n, h, 0, 0)),
        compiler_params=pltpu.CompilerParams(
            dimension_semantics=("parallel", "parallel")),
    )(f, e, t)
    # combine per-(batch, hw-block) partial sums outside; exact logical divisor
    return jnp.sum(partial[:, :, 0, 0]) / float(N * P * HW)


# ----------------------------------------------------------------------------
# JAX glue (gather / resize / point sampling — matches PyTorch semantics)
# ----------------------------------------------------------------------------
def bilinear_resize_nchw(x, out_h, out_w):
    """F.interpolate(x, size, mode='bilinear', align_corners=False)."""
    n, c, in_h, in_w = x.shape

    def axis_idx(out_size, in_size):
        scale = in_size / out_size
        d = jnp.arange(out_size, dtype=jnp.float32)
        src = jnp.maximum((d + 0.5) * scale - 0.5, 0.0)
        i0 = jnp.minimum(jnp.floor(src).astype(jnp.int32), in_size - 1)
        i1 = jnp.minimum(i0 + 1, in_size - 1)
        frac = src - i0.astype(jnp.float32)
        return i0, i1, frac

    y0, y1, fy = axis_idx(out_h, in_h)
    x0, x1, fx = axis_idx(out_w, in_w)
    top = (x[:, :, y0, :] * (1.0 - fy)[None, None, :, None]
           + x[:, :, y1, :] * fy[None, None, :, None])
    out = top[:, :, :, x0] * (1.0 - fx) + top[:, :, :, x1] * fx
    return out


def point_sample(inp, point_coords):
    """F.grid_sample(inp, 2*pc-1, bilinear, align_corners=False, zeros pad).

    inp: (M, C, H, W), point_coords: (M, P, 2) in [0, 1].  Returns (M, C, P).
    """
    M, C, H, W = inp.shape
    gx = point_coords[..., 0] * 2.0 - 1.0
    gy = point_coords[..., 1] * 2.0 - 1.0
    ix = ((gx + 1.0) * W - 1.0) / 2.0
    iy = ((gy + 1.0) * H - 1.0) / 2.0
    x0 = jnp.floor(ix).astype(jnp.int32)
    y0 = jnp.floor(iy).astype(jnp.int32)
    x1 = x0 + 1
    y1 = y0 + 1
    wx1 = ix - x0.astype(jnp.float32)
    wx0 = 1.0 - wx1
    wy1 = iy - y0.astype(jnp.float32)
    wy0 = 1.0 - wy1

    def gather(yy, xx):
        valid = ((xx >= 0) & (xx < W) & (yy >= 0) & (yy < H)).astype(inp.dtype)
        xxc = jnp.clip(xx, 0, W - 1)
        yyc = jnp.clip(yy, 0, H - 1)
        vals = jax.vmap(lambda img, yi, xi: img[:, yi, xi])(inp, yyc, xxc)
        return vals * valid[:, None, :]

    out = (gather(y0, x0) * (wy0 * wx0)[:, None, :]
           + gather(y0, x1) * (wy0 * wx1)[:, None, :]
           + gather(y1, x0) * (wy1 * wx0)[:, None, :]
           + gather(y1, x1) * (wy1 * wx1)[:, None, :])
    return out


def get_uncertain_point_coords_with_randomness(key, coarse_logits, num_points,
                                               oversample_ratio,
                                               importance_sample_ratio):
    num_boxes = coarse_logits.shape[0]
    num_sampled = int(num_points * oversample_ratio)
    k1, k2 = jax.random.split(key)
    point_coords = jax.random.uniform(k1, (num_boxes, num_sampled, 2),
                                      dtype=jnp.float32)
    point_logits = point_sample(coarse_logits, point_coords)   # (M, 1, S)
    point_uncertainties = -jnp.abs(point_logits)               # calculate_uncertainty
    num_uncertain_points = int(importance_sample_ratio * num_points)
    num_random_points = num_points - num_uncertain_points
    _, idx = jax.lax.top_k(point_uncertainties[:, 0, :], num_uncertain_points)
    sel = jnp.take_along_axis(point_coords, idx[:, :, None], axis=1)
    if num_random_points > 0:
        rnd = jax.random.uniform(k2, (num_boxes, num_random_points, 2),
                                 dtype=jnp.float32)
        sel = jnp.concatenate([sel, rnd], axis=1)
    return sel


# ----------------------------------------------------------------------------
# Matcher and criterion
# ----------------------------------------------------------------------------
class IdentityMatcher:
    # TODO(synk): the real Hungarian matcher (scipy linear_sum_assignment) has no
    # clean Pallas/TPU equivalent; deterministic identity matching is used instead.
    def __call__(self, outputs, targets):
        return [(jnp.arange(t['labels'].shape[0], dtype=jnp.int32),
                 jnp.arange(t['labels'].shape[0], dtype=jnp.int32))
                for t in targets]


class SetCriterion:
    def __init__(self, num_classes, matcher, weight_dict, eos_coef, losses,
                 num_points, oversample_ratio, importance_sample_ratio,
                 deep_supervision=True, rng_key=None):
        self.num_classes = num_classes
        self.matcher = matcher
        self.weight_dict = weight_dict
        self.eos_coef = eos_coef
        self.losses = losses
        self.empty_weight = jnp.ones(num_classes + 1,
                                     dtype=jnp.float32).at[-1].set(eos_coef)
        self.num_points = num_points
        self.oversample_ratio = oversample_ratio
        self.importance_sample_ratio = importance_sample_ratio
        self.deep_supervision = deep_supervision
        # Only used as a default; never mutated (jit friendly).
        self._rng_key = rng_key if rng_key is not None else jax.random.PRNGKey(0)

    # ---- permutation indices ------------------------------------------------
    def _get_src_permutation_idx(self, indices):
        batch_idx = jnp.concatenate(
            [jnp.full_like(src, i) for i, (src, _) in enumerate(indices)])
        src_idx = jnp.concatenate([src for src, _ in indices])
        return batch_idx, src_idx

    def _get_tgt_permutation_idx(self, indices):
        batch_idx = jnp.concatenate(
            [jnp.full_like(tgt, i) for i, (_, tgt) in enumerate(indices)])
        tgt_idx = jnp.concatenate([tgt for _, tgt in indices])
        return batch_idx, tgt_idx

    # ---- per-layer glue ------------------------------------------------------
    def _build_target_classes(self, pred_logits, targets, indices):
        batch_idx, src_idx = self._get_src_permutation_idx(indices)
        target_classes_o = jnp.concatenate(
            [t['labels'][J] for t, (_, J) in zip(targets, indices)]).astype(
                jnp.int32)
        target_classes = jnp.full(pred_logits.shape[:2], self.num_classes,
                                  dtype=jnp.int32)
        return target_classes.at[batch_idx, src_idx].set(target_classes_o)

    def _sample_mask_points(self, pred_masks, targets, indices, key):
        src_bidx, src_qidx = self._get_src_permutation_idx(indices)
        tgt_bidx, tgt_tidx = self._get_tgt_permutation_idx(indices)
        src_masks = pred_masks[src_bidx, src_qidx]                 # (M,Hp,Wp)
        # TODO(synk): nested_tensor_from_tensor_list padding to a common mask
        # size is skipped; all targets share one mask resolution here.
        target_masks = jnp.stack([t['masks'] for t in targets]).astype(
            src_masks.dtype)
        target_masks = target_masks[tgt_bidx, tgt_tidx]            # (M,Hm,Wm)
        src_masks = src_masks[:, None]
        target_masks = target_masks[:, None]

        # torch.no_grad point selection -> stop_gradient on the sampled coords
        pc = get_uncertain_point_coords_with_randomness(
            key, src_masks, self.num_points, self.oversample_ratio,
            self.importance_sample_ratio)
        pc = jax.lax.stop_gradient(pc)
        point_labels = point_sample(target_masks, pc)[:, 0, :]
        point_logits = point_sample(src_masks, pc)[:, 0, :]
        # TODO(synk): the point_sample 4-tap gather could be fused into the
        # mask-loss kernel via PrefetchScalarGridSpec (masks in HBM via
        # memory_space=pl.ANY) to avoid the (L,M,P) HBM round trip.
        return point_logits, point_labels

    # ---- distillation loss (main layer only) --------------------------------
    def loss_dec_cossim_v1(self, outputs, targets, out_feats, target_feats,
                           point_coords, indices, num_masks, num_points=128):
        tgt_sim_map = target_feats.astype(jnp.float32)             # (N,P,res*res)
        res = int(round(tgt_sim_map.shape[-1] ** 0.5))
        N, C = out_feats.shape[0], out_feats.shape[1]
        of = bilinear_resize_nchw(out_feats.astype(jnp.float32), res, res)
        of_chw = of.reshape(N, C, res * res)                       # HW lane-dense
        pc = point_coords.reshape(N, -1, 2)                        # B==1 safe
        # index = pc[...,0]*res + pc[...,1], matching the reference gather on
        # the (N, res*res, C) row-major flatten.
        point_indices = (pc[:, :, 0] * res + pc[:, :, 1]).astype(jnp.int32)
        extracted = jnp.take_along_axis(of_chw, point_indices[:, None, :],
                                        axis=2)                    # (N,C,P)
        extracted = jnp.transpose(extracted, (0, 2, 1))            # (N,P,C)
        loss = sd_loss_pallas(of_chw, extracted, tgt_sim_map)
        return {'loss_sd': loss}

    # ---- forward -------------------------------------------------------------
    def forward(self, outputs, targets, out_feats=None, target_feats=None,
                point_coords=None, rng_key=None):
        base_key = self._rng_key if rng_key is None else rng_key
        outputs_without_aux = {k: v for k, v in outputs.items()
                               if k != 'aux_outputs'}
        indices_main = self.matcher(outputs_without_aux, targets)
        # TODO(synk): torch.distributed all_reduce / world-size division skipped
        # (single host); clamp(min=1) preserved.
        num_masks = max(float(sum(int(t['labels'].shape[0]) for t in targets)),
                        1.0)

        # Layer 0 = main predictions; layers 1.. = aux decoder layers.
        layers = [(outputs_without_aux, indices_main)]
        if self.deep_supervision and 'aux_outputs' in outputs:
            for aux in outputs['aux_outputs']:
                layers.append((aux, self.matcher(aux, targets)))
        n_layers = len(layers)

        def key_for(base, li):
            return base if li == 0 else f'{base}_{li - 1}'

        losses = {}
        for loss in self.losses:
            if loss == 'labels':
                logits_l = jnp.stack([lo['pred_logits'] for lo, _ in layers])
                tcs = jnp.stack([
                    self._build_target_classes(lo['pred_logits'], targets, idx)
                    for lo, idx in layers])
                ce = weighted_cross_entropy_pallas(logits_l, tcs,
                                                   self.empty_weight)   # (L,)
                for li in range(n_layers):
                    losses[key_for('loss_ce', li)] = ce[li]
            elif loss == 'masks':
                logit_list, label_list = [], []
                for li, (lo, idx) in enumerate(layers):
                    k = jax.random.fold_in(base_key, li)
                    p_logits, p_labels = self._sample_mask_points(
                        lo['pred_masks'], targets, idx, k)
                    logit_list.append(p_logits)
                    label_list.append(p_labels)
                lm, ld = mask_losses_pallas(jnp.stack(logit_list),
                                            jnp.stack(label_list), num_masks)
                for li in range(n_layers):
                    losses[key_for('loss_mask', li)] = lm[li]
                    losses[key_for('loss_dice', li)] = ld[li]
            elif loss == 'sd':
                # 'sd' is computed for the main layer only (aux layers skip it).
                losses.update(self.loss_dec_cossim_v1(
                    outputs_without_aux, targets, out_feats, target_feats,
                    point_coords, indices_main, num_masks))
            else:
                raise AssertionError(
                    f'do you really want to compute {loss} loss?')
        return losses


# ----------------------------------------------------------------------------
# Main
# ----------------------------------------------------------------------------
if __name__ == "__main__":
    key = jax.random.PRNGKey(0)
    keys = jax.random.split(key, 12)

    B, Q, num_classes = 2, 8, 4
    K = num_classes + 1
    T = 3                     # targets per image
    Hp = Wp = 16              # predicted mask resolution
    Hm = Wm = 32              # GT mask resolution
    Cf, Hf, Wf = 32, 8, 8     # student feature map (NCHW)
    res = 16                  # teacher sim-map resolution
    P_sd = 8                  # number of distillation points

    outputs = {
        'pred_logits': jax.random.normal(keys[0], (B, Q, K), jnp.float32),
        'pred_masks': jax.random.normal(keys[1], (B, Q, Hp, Wp), jnp.float32),
        'aux_outputs': [{
            'pred_logits': jax.random.normal(keys[2], (B, Q, K), jnp.float32),
            'pred_masks': jax.random.normal(keys[3], (B, Q, Hp, Wp),
                                            jnp.float32),
        }],
    }
    targets = []
    for b in range(B):
        labels = jax.random.randint(keys[4 + b], (T,), 0, num_classes)
        masks = (jax.random.uniform(keys[6 + b], (T, Hm, Wm)) > 0.5).astype(
            jnp.float32)
        targets.append({'labels': labels, 'masks': masks})

    out_feats = jax.random.normal(keys[8], (B, Cf, Hf, Wf), jnp.float32)
    target_feats = jax.random.uniform(keys[9], (B, P_sd, res * res),
                                      minval=-1.0, maxval=1.0)
    point_coords = jax.random.randint(keys[10], (B, P_sd, 2), 0, res).astype(
        jnp.float32)

    criterion = SetCriterion(
        num_classes=num_classes,
        matcher=IdentityMatcher(),
        weight_dict={'loss_ce': 2.0, 'loss_mask': 5.0, 'loss_dice': 5.0,
                     'loss_sd': 1.0},
        eos_coef=0.1,
        losses=['labels', 'masks', 'sd'],
        num_points=16,
        oversample_ratio=3.0,
        importance_sample_ratio=0.75,
        deep_supervision=True,
        rng_key=keys[11],
    )

    losses = criterion.forward(outputs, targets, out_feats, target_feats,
                               point_coords)
    for v in losses.values():
        jax.block_until_ready(v)
    print("KERNEL_OK")
</pallas_src>

<mosaic_0001>
module attributes {stable_mosaic.version = 11 : i64} {
  func.func @_weighted_ce_kernel(%arg0: i32, %arg1: memref<1x8x128xf32, #tpu.memory_space<vmem>>, %arg2: memref<1x1x128xi32, #tpu.memory_space<vmem>>, %arg3: memref<1x1x128xf32, #tpu.memory_space<vmem>>, %arg4: memref<1x8x128xf32, #tpu.memory_space<vmem>>) attributes {dimension_semantics = [#tpu.dimension_semantics<parallel>], iteration_bounds = array<i64: 2>, scalar_prefetch = 0 : i64, scratch_operands = 0 : i64, tpu.core_type = #tpu.core_type<tc>, window_params = [{transform_indices = @transform_0, window_bounds = array<i64: 1, 8, 128>}, {transform_indices = @transform_1, window_bounds = array<i64: 1, 1, 128>}, {transform_indices = @transform_2, window_bounds = array<i64: 1, 1, 128>}, {transform_indices = @transform_3, window_bounds = array<i64: 1, 8, 128>}]} {
    %c0 = arith.constant 0 : index
    %c0_0 = arith.constant 0 : index
    %c0_1 = arith.constant 0 : index
    %0 = vector.load %arg1[%c0, %c0_0, %c0_1] : memref<1x8x128xf32, #tpu.memory_space<vmem>>, vector<1x8x128xf32>
    %1 = vector.shape_cast %0 : vector<1x8x128xf32> to vector<8x128xf32>
    %c0_2 = arith.constant 0 : index
    %c0_3 = arith.constant 0 : index
    %c0_4 = arith.constant 0 : index
    %2 = vector.load %arg2[%c0_2, %c0_3, %c0_4] : memref<1x1x128xi32, #tpu.memory_space<vmem>>, vector<1x1x128xi32>
    %3 = vector.shape_cast %2 : vector<1x1x128xi32> to vector<1x128xi32>
    %c0_5 = arith.constant 0 : index
    %c0_6 = arith.constant 0 : index
    %c0_7 = arith.constant 0 : index
    %4 = vector.load %arg3[%c0_5, %c0_6, %c0_7] : memref<1x1x128xf32, #tpu.memory_space<vmem>>, vector<1x1x128xf32>
    %5 = vector.shape_cast %4 : vector<1x1x128xf32> to vector<1x128xf32>
    %cst = arith.constant dense<0xFF800000> : vector<128xf32>
    %6 = vector.multi_reduction <maximumf>, %1, %cst [0] : vector<8x128xf32> to vector<128xf32>
    %7 = vector.shape_cast %6 : vector<128xf32> to vector<1x128xf32>
    %8 = vector.broadcast %7 : vector<1x128xf32> to vector<8x128xf32>
    %9 = arith.subf %1, %8 : vector<8x128xf32>
    %10 = math.exp %9 : vector<8x128xf32>
    %cst_8 = arith.constant dense<0.000000e+00> : vector<128xf32>
    %11 = vector.multi_reduction <add>, %10, %cst_8 [0] : vector<8x128xf32> to vector<128xf32>
    %12 = vector.shape_cast %11 : vector<128xf32> to vector<1x128xf32>
    %13 = math.log %12 : vector<1x128xf32>
    %14 = arith.addf %7, %13 : vector<1x128xf32>
    %15 = tpu.iota {dimensions = array<i32: 0>} : vector<8x128xi32>
    %16 = vector.broadcast %3 : vector<1x128xi32> to vector<8x128xi32>
    %17 = arith.cmpi eq, %15, %16 : vector<8x128xi32>
    %cst_9 = arith.constant 0.000000e+00 : f32
    %18 = vector.broadcast %cst_9 : f32 to vector<8x128xf32>
    %19 = arith.select %17, %1, %18 : vector<8x128xi1>, vector<8x128xf32>
    %cst_10 = arith.constant dense<0.000000e+00> : vector<128xf32>
    %20 = vector.multi_reduction <add>, %19, %cst_10 [0] : vector<8x128xf32> to vector<128xf32>
    %21 = vector.shape_cast %20 : vector<128xf32> to vector<1x128xf32>
    %22 = arith.subf %14, %21 : vector<1x128xf32>
    %23 = arith.mulf %5, %22 : vector<1x128xf32>
    %24 = vector.shape_cast %23 : vector<1x128xf32> to vector<1x1x128xf32>
    %cst_11 = arith.constant dense<0.000000e+00> : vector<1xf32>
    %25 = vector.multi_reduction <add>, %24, %cst_11 [1, 2] : vector<1x1x128xf32> to vector<1xf32>
    %26 = vector.shape_cast %25 : vector<1xf32> to vector<1x1x1xf32>
    %27 = vector.extract %26[0, 0, 0] : f32 from vector<1x1x1xf32>
    %28 = vector.shape_cast %5 : vector<1x128xf32> to vector<1x1x128xf32>
    %cst_12 = arith.constant dense<0.000000e+00> : vector<1xf32>
    %29 = vector.multi_reduction <add>, %28, %cst_12 [1, 2] : vector<1x1x128xf32> to vector<1xf32>
    %30 = vector.shape_cast %29 : vector<1xf32> to vector<1x1x1xf32>
    %31 = vector.extract %30[0, 0, 0] : f32 from vector<1x1x1xf32>
    %32 = arith.divf %27, %31 : f32
    %33 = vector.broadcast %32 : f32 to vector<1x8x128xf32>
    %c0_13 = arith.constant 0 : index
    %c0_14 = arith.constant 0 : index
    %c0_15 = arith.constant 0 : index
    %34 = vector.load %arg4[%c0_13, %c0_14, %c0_15] : memref<1x8x128xf32, #tpu.memory_space<vmem>>, vector<1x8x128xf32>
    tpu.vector_store %arg4[%c0_13, %c0_14, %c0_15], %33 {strides = array<i32>} : memref<1x8x128xf32, #tpu.memory_space<vmem>>, vector<1x8x128xf32>,
    return
  }
  func.func @transform_0(%arg0: i32) -> (i32, i32, i32) {
    %c0_i32 = arith.constant 0 : i32
    %c0_i32_0 = arith.constant 0 : i32
    %c0_i32_1 = arith.constant 0 : i32
    return %arg0, %c0_i32, %c0_i32_0 : i32, i32, i32
  }
  func.func @transform_1(%arg0: i32) -> (i32, i32, i32) {
    %c0_i32 = arith.constant 0 : i32
    %c0_i32_0 = arith.constant 0 : i32
    %c0_i32_1 = arith.constant 0 : i32
    return %arg0, %c0_i32, %c0_i32_0 : i32, i32, i32
  }
  func.func @transform_2(%arg0: i32) -> (i32, i32, i32) {
    %c0_i32 = arith.constant 0 : i32
    %c0_i32_0 = arith.constant 0 : i32
    %c0_i32_1 = arith.constant 0 : i32
    return %arg0, %c0_i32, %c0_i32_0 : i32, i32, i32
  }
  func.func @transform_3(%arg0: i32) -> (i32, i32, i32) {
    %c0_i32 = arith.constant 0 : i32
    %c0_i32_0 = arith.constant 0 : i32
    %c0_i32_1 = arith.constant 0 : i32
    return %arg0, %c0_i32, %c0_i32_0 : i32, i32, i32
  }
}

</mosaic_0001>

<bundles_post_ra>
// kernel: tpu_custom_call.1
= control target key start
LH: loop header
LB: loop body
LE: loop exit
PB: predicated region body
PF: predicated region fallthrough
CT: control target
= control target key end

     0   :  { %s893_s0 = inlined_call_operand.hbm [shape: f32[2,8,128], index: 0, kind: input, shape index: {}]   ;;  %s894_s1 = inlined_call_operand.hbm [shape: s32[2,1,128], index: 1, kind: input, shape index: {}]   ;;  %s895_s2 = inlined_call_operand.hbm [shape: f32[2,1,128], index: 2, kind: input, shape index: {}]   ;;  %s896_s3 = inlined_call_operand.hbm [shape: f32[2,8,128], index: 3, kind: output, shape index: {}]  }
   0x1   :  { %897 = sst [smem:[#allocation12_spill]] %s894_s1 }
   0x2   :  { %8 = vsyncpa [#allocation3], 0 }
   0x3   :  { %10 = vsyncpa [#allocation3 + $0x1], 0 }
   0x4   :  { %11 = vsyncpa [#allocation6], 0 }
   0x5   :  { %13 = vsyncpa [#allocation6 + $0x1], 0 }
   0x6   :  { %14 = vsyncpa [#allocation4], 0 }
   0x7   :  { %16 = vsyncpa [#allocation4 + $0x1], 0  ;;  %s713_s12 = smov 0   ;;  %s715_s13 = smov 0  }
   0x8   :  { %s717_s14 = smov 0   ;;  %s719_s15 = smov 0  }
   0x9 LB: > { %s734_s16 = sadd.s32 4294967295, %s691_s15   ;;  %s450_s17 = sadd.s32 4294967294, %s691_s15   ;;  %s691_s15 = sphi %s719_s15, %s907_s15   ;;  %s687_s14 = sphi %s717_s14, %s906_s14   ;;  %s683_s13 = sphi %s715_s13, %s905_s13   ;;  %s679_s12 = sphi %s713_s12, %s904_s12  }
   0xa   : > { %s738_s18 = sadd.s32 1, %s691_s15   ;;  %s29_s19 = sadd.s32 1, %s687_s14 }
   0xb   : > { %s26_s20 = ssub.s32 %s691_s15, %s738_s18  ;;  %p36_p0 = scmp.ne.s32.totalorder %s687_s14, %s683_s13 }
   0xc   : > { %p27_p1 = scmp.eq.s32.totalorder %s26_s20, 0  ;;  %p37_p2 = scmp.eq.s32.totalorder %s691_s15, 0 }
   0xd   : > { %p42_p3 = scmp.ne.s32.totalorder %s683_s13, %s679_s12  ;;  %p43_p4 = scmp.eq.s32.totalorder %s734_s16, 0 }
   0xe   : > { %s750_s21 = scalar_select %p27_p1, %s687_s14, %s29_s19  }
   0xf   : > { %p38_p5 = por %p37_p2, %p36_p0  ;;  %p752_p6 = por %p43_p4, %p42_p3 }
  0x10   : > { %p118_p7 = scmp.eq.s32.totalorder %s734_s16, 1  ;;  %p124_p8 = scmp.eq.s32.totalorder %s450_s17, 1 }
  0x11   : > { %p452_p9 = scmp.ge.s32.totalorder %s691_s15, 2  ;;  %p490_p10 = scmp.lt.s32.totalorder %s691_s15, 2 }
  0x12   : > { %p759_p11 = por %p118_p7, %p36_p0  ;;  %p763_p12 = por %p124_p8, %p42_p3 }
  0x13   : > { %s768_s25 = sand.u32 1, %s687_s14   ;;  %p770_p13 = pnand %p490_p10, %p38_p5 }
  0x14   : > { %s163_s27 = sand.u32 1, %s691_s15   ;;  %s902_s1 = sld [smem:[#allocation12_spill]] }
  0x15   : > { %s166_s4 = scalar_lea.vmem [#allocation5], %s768_s25  ;;  %p455_p0 = scmp.ge.s32.totalorder %s691_s15, 1 }
  0x16   : > { %s173_s5 = sshll.u32 %s166_s4, 4  ;;  %s781_s7 = scalar_lea.sflag [#allocation6], %s163_s27  ;;  %s174_s5 = int_to_ptr.vmem [resolvable:$true] %s173_s5 }
  0x17   : > { %p535_p2 = pneg %p770_p13 }
  0x1a   : > { %s169_s30 = scalar_lea.hbm %s902_s1, %s691_s15  ;;  %s538_s17 = scalar_lea.hbm %s902_s1, 2 }
  0x1b   : > { %s171_s6 = sshll.u32 %s169_s30, 4  ;;  %s172_s6 = int_to_ptr.hbm [resolvable:$true] %s171_s6 }
  0x1c   : > { %s531_s8 = sshra.s32 %s172_s6, 4  ;;  %s532_s8 = int_to_ptr.hbm [resolvable:$true] %s531_s8 }
  0x1d   : > { %s533_s9 = scalar_lea.hbm %s532_s8, 1  ;;  %p539_p5 = scmp.lt.s32.totalorder %s532_s8, %s902_s1 }
  0x1e   : > { %p534_p1 = scmp.ne.s32.totalorder %s532_s8, %s533_s9  ;;  %p540_p7 = scmp.lt.s32.totalorder %s538_s17, %s533_s9 }
  0x20   : > { %p536_p3 = pnand %p535_p2, %p534_p1  ;;  %p541_p8 = por %p540_p7, %p539_p5 }
  0x22   : > { %p537_p4 = pneg %p536_p3 }
  0x24   : > { %p542_p10 = pnand %p541_p8, %p537_p4 }
  0x26   : > { %545 = shalt.err (!%p542_p10)
}
  0x27   : > { %482 = dma.hbm_to_vmem [thread:$0]  (!%p770_p13), %s172_s6, 16, %s174_s5, %s781_s7  }
  0x28   : > { %p195_p1 = scmp.lt.s32.totalorder %s691_s15, 3  ;;  %s453_s27 = sshll.u32 %s768_s25, 3 }
  0x29   : > { %s454_s28 = sshll.u32 %s691_s15, 3  ;;  %s148_s9 = scalar_lea.vmem [#allocation2], %s453_s27 }
  0x2a   : > { %p802_p3 = pnand %p455_p0, %p195_p1  ;;  %s152_s8 = scalar_lea.hbm %s893_s0, %s454_s28 }
  0x2b   : > { %s156_s10 = sshll.u32 %s148_s9, 4  ;;  %s154_s11 = sshll.u32 %s152_s8, 4  ;;  %s157_s10 = int_to_ptr.vmem [resolvable:$true] %s156_s10  ;;  %s155_s11 = int_to_ptr.hbm [resolvable:$true] %s154_s11 }
  0x2c   : > { %s145_s17 = scalar_lea.sflag [#allocation3], %s768_s25  ;;  %s561_s5 = sshra.s32 %s155_s11, 4  ;;  %s562_s5 = int_to_ptr.hbm [resolvable:$true] %s561_s5 }
  0x2d   : > { %s563_s6 = scalar_lea.hbm %s562_s5, 8  ;;  %s568_s1 = scalar_lea.hbm %s893_s0, 16 }
  0x2e   : > { %p564_p4 = scmp.ne.s32.totalorder %s562_s5, %s563_s6  ;;  %p569_p7 = scmp.lt.s32.totalorder %s562_s5, %s893_s0 }
  0x2f   : > { %p570_p8 = scmp.lt.s32.totalorder %s568_s1, %s563_s6 }
  0x30   : > { %p566_p0 = pnand %p564_p4, %p535_p2 }
  0x31   : > { %p571_p10 = por %p570_p8, %p569_p7 }
  0x32   : > { %p567_p5 = pneg %p566_p0 }
  0x34   : > { %p572_p1 = pnand %p571_p10, %p567_p5 }
  0x36   : > { %575 = shalt.err (!%p572_p1)
}
  0x37   : > { %479 = dma.hbm_to_vmem [thread:$0]  (!%p770_p13), %s155_s11, 128, %s157_s10, %s145_s17  }
  0x38   : > { %s186_s8 = scalar_lea.hbm %s895_s2, %s691_s15  ;;  %s183_s9 = scalar_lea.vmem [#allocation7], %s768_s25 }
  0x39   : > { %s190_s19 = sshll.u32 %s183_s9, 4  ;;  %s188_s20 = sshll.u32 %s186_s8, 4  ;;  %s191_s19 = int_to_ptr.vmem [resolvable:$true] %s190_s19  ;;  %s189_s20 = int_to_ptr.hbm [resolvable:$true] %s188_s20 }
  0x3a   : > { %s591_s5 = sshra.s32 %s189_s20, 4  ;;  %s598_s10 = scalar_lea.hbm %s895_s2, 2  ;;  %s592_s5 = int_to_ptr.hbm [resolvable:$true] %s591_s5 }
  0x3b   : > { %s593_s1 = scalar_lea.hbm %s592_s5, 1  ;;  %p599_p7 = scmp.lt.s32.totalorder %s592_s5, %s895_s2 }
  0x3c   : > { %p594_p4 = scmp.ne.s32.totalorder %s592_s5, %s593_s1  ;;  %p600_p8 = scmp.lt.s32.totalorder %s598_s10, %s593_s1 }
  0x3e   : > { %p596_p0 = pnand %p594_p4, %p535_p2  ;;  %p601_p10 = por %p600_p8, %p599_p7 }
  0x40   : > { %p597_p5 = pneg %p596_p0 }
  0x42   : > { %p602_p1 = pnand %p601_p10, %p597_p5 }
  0x44   : > { %605 = shalt.err (!%p602_p1)
}
  0x45   : > { %485 = dma.hbm_to_vmem [thread:$0]  (!%p770_p13), %s189_s20, 16, %s191_s19, %s781_s7  }
  0x46   : > { %199 = sbr.rel (%p802_p3) target bundleno = 391 (0x187), region = 32  ;;  %s841_s25 = sand.u32 (!%p802_p3), 1, %s683_s13  }
  0x47   : > { %s456_s28 = sshll.u32 (!%p802_p3), %s841_s25, 3  ;;  %s202_s27 = scalar_lea.sflag (!%p802_p3), [#allocation3], %s841_s25 }
  0x48   : > { %s205_s4 = scalar_lea.vmem (!%p802_p3), [#allocation2], %s456_s28 }
  0x4b   : > { %666 = dma.done.wait (%p752_p6), %s202_s27, 128  }
  0x4c   : > { %668 = vsyncadd (%p752_p6), %s202_s27, 4294967168  ;;  %s211_s26 = sand.u32 1, %s734_s16   ;;  %s214_s29 = scalar_lea.vmem [#allocation5], %s841_s25 }
  0x4d   : > { %s212_s7 = scalar_lea.sflag [#allocation6], %s211_s26 }
  0x4e   : > { %670 = dma.done.wait (%p752_p6), %s212_s7, 32  }
  0x4f   : > { %672 = vsyncadd (%p752_p6), %s212_s7, 4294967264  ;;  %v255_v0 = vld [vmem:[%s205_s4] sm:$0xff]  ;;  %v276_v6 = vlaneseq  ;;  %s223_s22 = scalar_lea.vmem [#allocation7], %s841_s25  ;;  %vm289_vm1 = vcmask 1040384   ;;  %s459_s19 = sshll.u32 %s734_s16, 3 }
  0x50   : > { %v258_v1 = vrot.slane %v255_v0, 4  ;;  %v524_v10 = vld [vmem:[%s214_s29] ss:$0 sm:$0xff]  ;;  %s340_s1 = scalar_lea.hbm %s896_s3, %s459_s19  ;;  %s254_s6 = scalar_lea.vmem [#allocation8], %s456_s28 }
  0x51   : > { %v277_v9 = vshrl.u32 %v276_v6, 7  ;;  %v257_v29 = vld [vmem:[%s223_s22] sm:$0x1]  ;;  %s342_s30 = sshll.u32 %s254_s6, 4  ;;  %s344_s10 = sshll.u32 %s340_s1, 4  ;;  %s343_s30 = int_to_ptr.vmem [resolvable:$true] %s342_s30  ;;  %s345_s10 = int_to_ptr.hbm [resolvable:$true] %s344_s10 }
  0x52   : > { %v259_v2 = vmax.f32 %v255_v0, %v258_v1  ;;  %v300_v33 = vsel %vm289_vm1, %v257_v29, 0.0  ;;  %s330_s27 = scalar_lea.sflag [#allocation4], %s841_s25  ;;  %s635_s4 = sshra.s32 %s345_s10, 4  ;;  %s636_s4 = int_to_ptr.hbm [resolvable:$true] %s635_s4 }
  0x53   : > { %vm279_vm0 = vcmp.eq.s32.totalorder %v277_v9, %v524_v10  ;;  %s637_s26 = scalar_lea.hbm %s636_s4, 8  ;;  %s641_s28 = scalar_lea.hbm %s896_s3, 16 }
  0x54   : > { %v260_v3 = vrot.slane %v259_v2, 2  ;;  %v280_v12 = vsel %vm279_vm0, %v255_v0, 0.0  ;;  %p638_p6 = scmp.ne.s32.totalorder %s636_s4, %s637_s26  ;;  %p642_p3 = scmp.lt.s32.totalorder %s636_s4, %s896_s3 }
  0x55   : > { %v281_v14 = vrot.slane %v280_v12, 4  ;;  %p643_p4 = scmp.lt.s32.totalorder %s641_s28, %s637_s26 }
  0x56   : > { %v261_v4 = vmax.f32 %v259_v2, %v260_v3  ;;  %p639_p13 = pnand %p638_p6, %p759_p11 }
  0x57   : > { %v282_v17 = vadd.f32 %v281_v14, %v280_v12  ;;  %p644_p0 = por %p643_p4, %p642_p3 }
  0x58   : > { %v262_v5 = vrot.slane %v261_v4, 1  ;;  %p640_p2 = pneg %p639_p13 }
  0x59   : > { %v283_v20 = vrot.slane %v282_v17, 2 }
  0x5a   : > { %v263_v7 = vmax.f32 %v261_v4, %v262_v5  ;;  %p645_p5 = pnand %p644_p0, %p640_p2 }
  0x5b   : > { %v284_v23 = vadd.f32 %v283_v20, %v282_v17 }
  0x5c   : > { %v264_v8 = vsub.f32 %v255_v0, %v263_v7 }
  0x5d   : > { %v285_v24 = vrot.slane %v284_v23, 1 }
  0x5e   : > { %v265_v11 = vmul.f32 1.442695, %v264_v8 }
  0x5f   : > { %v286_v27 = vadd.f32 %v285_v24, %v284_v23 }
  0x60   : > { %525 = vpow2.f32 %v265_v11 }
  0x66   : > { %v526_v13 = vpop.eup %525 }
  0x67   : > { %v267_v15 = vrot.slane %v526_v13, 4 }
  0x69   : > { %v268_v16 = vadd.f32 %v526_v13, %v267_v15 }
  0x6b   : > { %v269_v18 = vrot.slane %v268_v16, 2 }
  0x6d   : > { %v270_v19 = vadd.f32 %v269_v18, %v268_v16 }
  0x6f   : > { %v271_v21 = vrot.slane %v270_v19, 1 }
  0x71   : > { %v272_v22 = vadd.f32 %v271_v21, %v270_v19 }
  0x73   : > { %527 = vlog2.f32 %v272_v22 }
  0x79   : > { %v528_v25 = vpop.eup %527 }
  0x7a   : > { %v274_v26 = vmul.f32 0.6931472, %v528_v25 }
  0x7c   : > { %v275_v28 = vadd.f32 %v274_v26, %v263_v7 }
  0x7e   : > { %v287_v30 = vsub.f32 %v275_v28, %v286_v27 }
  0x80   : > { %v288_v31 = vmul.f32 %v287_v30, %v257_v29 }
  0x82   : > { %v290_v32 = vsel %vm289_vm1, %v288_v31, 0.0 }
  0x83   : > { %291 = vadd.xlane.f32.xlu0 %v290_v32 }
  0x8b   : > { %301 = vadd.xlane.f32.xlu0 %v300_v33 }
  0xf6   : > { %v292_v34 = vpop.xlane.xlu0 %291 }
  0xf7   : > { %v293_v35 = vrot.slane %v292_v34, 4 }
  0xf9   : > { %v294_v36 = vadd.f32 %v293_v35, %v292_v34 }
  0xfb   : > { %v295_v37 = vrot.slane %v294_v36, 2 }
  0xfd   : > { %v296_v38 = vadd.f32 %v295_v37, %v294_v36 }
  0xfe   : > { %v302_v39 = vpop.xlane.xlu0 %301 }
  0xff   : > { %v303_v40 = vrot.slane %v302_v39, 4  ;;  %v297_v41 = vrot.slane %v296_v38, 1 }
 0x101   : > { %v304_v42 = vadd.f32 %v303_v40, %v302_v39  ;;  %v298_v43 = vadd.f32 %v297_v41, %v296_v38 }
 0x103   : > { %v305_v44 = vrot.slane %v304_v42, 2  ;;  %462 = vpush %v298_v43 }
 0x105   : > { %v306_v45 = vadd.f32 %v305_v44, %v304_v42 }
 0x107   : > { %v307_v46 = vrot.slane %v306_v45, 1 }
 0x109   : > { %v308_v47 = vadd.f32 %v307_v46, %v306_v45 }
 0x10b   : > { %464 = vpush %v308_v47 }
 0x134   : > { %s463_s8 = spop %462 }
 0x13c   : > { %s465_s9 = spop %464 }
 0x13d   : > { %v310_v48 = vstv %s465_s9 }
 0x13e   : > { %529 = vrcp.f32 %v310_v48  ;;  %v322_v52 = vand.u32 2147483648, %v310_v48  ;;  %v320_v54 = vand.u32 2147483647, %v310_v48  ;;  %vm316_vm3 = vweird.f32 %v310_v48 }
 0x140   : > { %v323_v56 = vor.u32 1.1754944e-38, %v322_v52  ;;  %vm321_vm5 = vcmp.eq.f32.partialorder %v320_v54, 8.507059e+37 }
 0x144   : > { %v530_v49 = vpop.eup %529 }
 0x145   : > { %v312_v50 = vmul.f32 %v530_v49, %v310_v48  ;;  %vm317_vm2 = vweird.f32 %v530_v49 }
 0x146   : > { %vm318_vm4 = vmor %vm316_vm3, %vm317_vm2 }
 0x147   : > { %v313_v51 = vsub.f32 1.0, %v312_v50 }
 0x149   : > { %v314_v53 = vmul.f32 %v530_v49, %v313_v51 }
 0x14b   : > { %v315_v55 = vadd.f32 %v530_v49, %v314_v53 }
 0x14d   : > { %v319_v57 = vsel %vm318_vm4, %v530_v49, %v315_v55 }
 0x14e   : > { %v324_v58 = vsel %vm321_vm5, %v323_v56, %v319_v57 }
 0x14f   : > { %466 = vpush %v324_v58 }
 0x180   : > { %s467_s11 = spop %466 }
 0x181   : > { %s326_s17 = smul.f32 %s467_s11, %s463_s8 }
 0x183   : > { %v327_v59 = vstv %s326_s17 }
 0x184   : > { %328 = vst [vmem:[%s254_s6] sm:$0xff] %v327_v59 }
 0x185   : > { %648 = shalt.err (!%p645_p5)
}
 0x186   : > { %474 = dma.vmem_to_hbm [thread:$0]  (%p759_p11), %s343_s30, 128, %s345_s10, %s330_s27  }
 0x187 PF: > { %s356_s25 = sand.u32 1, %s679_s12   ;;  %p487_p7 = pnand %p452_p9, %p763_p12 }
 0x188   : > { %s357_s8 = scalar_lea.sflag [#allocation4], %s356_s25 }
 0x189   : > { %p488_p8 = pneg %p487_p7 }
 0x18b   : > { %674 = dma.done.wait (%p488_p8), %s357_s8, 128  }
 0x18c   : > { %676 = vsyncadd (%p488_p8), %s357_s8, 4294967168  ;;  %p19_p10 = scmp.ge.s32.totalorder %s738_s18, 4   ;;  %s904_s12 = smov %s683_s13 }
 0x18d   : > { %s905_s13 = smov %s687_s14  ;;  %s906_s14 = smov %s750_s21 }
 0x18e   : > { %s907_s15 = smov %s738_s18  ;;  %21 = sbr.rel (!%p19_p10) target bundleno = 9 (0x9), region = 101 }
 0x193   :  { %363 = vsyncpa [#allocation3], 1 }
 0x194   :  { %365 = vsyncpa [#allocation3 + $0x1], 1 }
 0x195   :  { %366 = vsyncpa [#allocation6], 1 }
 0x196   :  { %368 = vsyncpa [#allocation6 + $0x1], 1 }
 0x197   :  { %369 = vsyncpa [#allocation4], 1 }
 0x198   :  { %371 = vsyncpa [#allocation4 + $0x1], 1 }

</bundles_post_ra>
